<compile_context>
chip_gen: v7x
topology: tpu7x:2x2x1
jax: 0.10.0
libtpu: 0.0.40
codegen_flags: <defaults>
</compile_context>

<pallas_src>
import jax
import jax.numpy as jnp
from jax.experimental import pallas as pl
from jax.experimental.pallas import tpu as pltpu

CLASSES = 6
IN_FEATURES = 384
HIDDEN = 128
OUT_PAD = 128          # lane-dense padded output width (multiple of 128 >= CLASSES)
BN_EPS = 1e-5
TM_MAX = 1024          # default batch tile (multiple of 128/256, ~1.5 MiB f32)


def _concat_fc_kernel(x_ref, w1t_ref, b1_ref, w2t_ref, b2_ref, o_ref):
    # fc1 with eval-mode BatchNorm1d pre-folded into (w1t, b1):
    #   (TM, 384) @ (384, 128) + (1, 128)
    h = jnp.dot(x_ref[...], w1t_ref[...],
                preferred_element_type=jnp.float32) + b1_ref[...]

    # Dropout(0.4) in eval mode -> identity.
    # TODO(synk): training-mode dropout (stochastic mask via pltpu.prng_*) not emitted.

    # fc2, lane-dense (zero-padded to 128 output lanes):
    #   (TM, 128) @ (128, 128) + (1, 128)
    o_ref[...] = (jnp.dot(h, w2t_ref[...],
                          preferred_element_type=jnp.float32)
                  + b2_ref[...]).astype(o_ref.dtype)


def _round_up(x, m):
    return ((x + m - 1) // m) * m


def concat_fc_forward(concat_x, params, *, tm=TM_MAX):
    """concat_x: (B, ...) with prod(...) == 384.  Returns (B, 6) float32."""
    B = concat_x.shape[0]
    x2d = concat_x.reshape(B, -1).astype(jnp.float32)   # x.view(x.size(0), -1)
    assert x2d.shape[1] == IN_FEATURES

    # ---- host-side parameter folding (eval-mode BN folded into fc1) ----
    inv_std = jax.lax.rsqrt(params["bn_var"].astype(jnp.float32) + BN_EPS)
    scale = params["bn_gamma"].astype(jnp.float32) * inv_std            # (128,)
    w1t = params["w1"].astype(jnp.float32).T * scale[None, :]           # (384, 128)
    b1 = ((params["b1"].astype(jnp.float32) - params["bn_mean"]) * scale
          + params["bn_beta"]).reshape(1, HIDDEN)                       # (1, 128)

    # Lane-dense fc2: pad W2^T / b2 from 6 -> 128 output columns with zeros.
    w2t = jnp.zeros((HIDDEN, OUT_PAD), jnp.float32).at[:, :CLASSES].set(
        params["w2"].astype(jnp.float32).T)                             # (128, 128)
    b2 = jnp.zeros((1, OUT_PAD), jnp.float32).at[:, :CLASSES].set(
        params["b2"].astype(jnp.float32).reshape(1, CLASSES))           # (1, 128)

    # ---- batch tiling: tile rows, pad B to a multiple of the tile ----
    tm = _round_up(max(8, min(tm, _round_up(B, 8))), 8)
    b_pad = _round_up(B, tm)
    if b_pad != B:
        x2d = jnp.pad(x2d, ((0, b_pad - B), (0, 0)))
    grid = (b_pad // tm,)

    out = pl.pallas_call(
        _concat_fc_kernel,
        out_shape=jax.ShapeDtypeStruct((b_pad, OUT_PAD), jnp.float32),
        grid_spec=pltpu.PrefetchScalarGridSpec(
            num_scalar_prefetch=0,
            grid=grid,
            in_specs=[
                pl.BlockSpec((tm, IN_FEATURES), lambda i: (i, 0)),       # x tile
                pl.BlockSpec((IN_FEATURES, HIDDEN), lambda i: (0, 0)),   # W1^T (folded)
                pl.BlockSpec((1, HIDDEN), lambda i: (0, 0)),             # b1 (folded)
                pl.BlockSpec((HIDDEN, OUT_PAD), lambda i: (0, 0)),       # W2^T (padded)
                pl.BlockSpec((1, OUT_PAD), lambda i: (0, 0)),            # b2 (padded)
            ],
            out_specs=pl.BlockSpec((tm, OUT_PAD), lambda i: (i, 0)),
        ),
        compiler_params=pltpu.CompilerParams(
            dimension_semantics=("parallel",)),
    )(x2d, w1t, b1, w2t, b2)

    return out[:B, :CLASSES]


def init_params(key):
    """Deterministic synthetic parameters with PyTorch-default-style init."""
    k1, k2, k3, k4, k5, k6 = jax.random.split(key, 6)
    bound1 = 1.0 / jnp.sqrt(IN_FEATURES)
    bound2 = 1.0 / jnp.sqrt(HIDDEN)
    return {
        "w1": jax.random.uniform(k1, (HIDDEN, IN_FEATURES), jnp.float32,
                                 -bound1, bound1),
        "b1": jax.random.uniform(k2, (HIDDEN,), jnp.float32, -bound1, bound1),
        "w2": jax.random.uniform(k3, (CLASSES, HIDDEN), jnp.float32,
                                 -bound2, bound2),
        "b2": jax.random.uniform(k4, (CLASSES,), jnp.float32, -bound2, bound2),
        # BatchNorm1d(128) affine params + running stats (non-trivial but
        # deterministic so the BN fold is actually exercised).
        "bn_gamma": 1.0 + 0.1 * jax.random.normal(k5, (HIDDEN,), jnp.float32),
        "bn_beta": 0.1 * jax.random.normal(k6, (HIDDEN,), jnp.float32),
        "bn_mean": 0.05 * jnp.arange(HIDDEN, dtype=jnp.float32) / HIDDEN,
        "bn_var": 1.0 + 0.01 * jnp.arange(HIDDEN, dtype=jnp.float32) / HIDDEN,
    }


def _reference(concat_x, params):
    """Pure-JAX reference of the same (eval-mode) forward."""
    B = concat_x.shape[0]
    x = concat_x.reshape(B, -1).astype(jnp.float32)
    h = x @ params["w1"].T + params["b1"]
    h = (h - params["bn_mean"]) / jnp.sqrt(params["bn_var"] + BN_EPS)
    h = h * params["bn_gamma"] + params["bn_beta"]
    return h @ params["w2"].T + params["b2"]


if __name__ == "__main__":
    key = jax.random.PRNGKey(0)
    kx, kp = jax.random.split(key)
    params = init_params(kp)

    # Case 1: small batch, single full tile.
    B = 8
    concat_x = jax.random.normal(kx, (B, 3, 128), jnp.float32)
    out = jax.block_until_ready(concat_fc_forward(concat_x, params))
    ref = _reference(concat_x, params)
    assert out.shape == (B, CLASSES)
    assert jnp.allclose(out, ref, atol=1e-4, rtol=1e-4), "mismatch vs reference (case 1)"

    # Case 2: ragged batch with a forced small tile -> exercises batch padding
    # and a multi-step parallel grid.
    B2 = 13
    concat_x2 = jax.random.normal(jax.random.PRNGKey(1), (B2, 3, 128), jnp.float32)
    out2 = jax.block_until_ready(concat_fc_forward(concat_x2, params, tm=8))
    ref2 = _reference(concat_x2, params)
    assert out2.shape == (B2, CLASSES)
    assert jnp.allclose(out2, ref2, atol=1e-4, rtol=1e-4), "mismatch vs reference (case 2)"

    print("KERNEL_OK")
</pallas_src>

<mosaic_0001>
module attributes {stable_mosaic.version = 11 : i64} {
  func.func @_concat_fc_kernel(%arg0: i32, %arg1: memref<8x384xf32, #tpu.memory_space<vmem>>, %arg2: memref<384x128xf32, #tpu.memory_space<vmem>>, %arg3: memref<1x128xf32, #tpu.memory_space<vmem>>, %arg4: memref<128x128xf32, #tpu.memory_space<vmem>>, %arg5: memref<1x128xf32, #tpu.memory_space<vmem>>, %arg6: memref<8x128xf32, #tpu.memory_space<vmem>>) attributes {dimension_semantics = [#tpu.dimension_semantics<parallel>], iteration_bounds = array<i64: 1>, scalar_prefetch = 0 : i64, scratch_operands = 0 : i64, tpu.core_type = #tpu.core_type<tc>, window_params = [{transform_indices = @transform_0, window_bounds = array<i64: 8, 384>}, {pipeline_mode = #tpu.pipeline_mode<synchronous>, transform_indices = @transform_1, window_bounds = array<i64: 384, 128>}, {pipeline_mode = #tpu.pipeline_mode<synchronous>, transform_indices = @transform_2, window_bounds = array<i64: 1, 128>}, {pipeline_mode = #tpu.pipeline_mode<synchronous>, transform_indices = @transform_3, window_bounds = array<i64: 128, 128>}, {pipeline_mode = #tpu.pipeline_mode<synchronous>, transform_indices = @transform_4, window_bounds = array<i64: 1, 128>}, {transform_indices = @transform_5, window_bounds = array<i64: 8, 128>}]} {
    %c0 = arith.constant 0 : index
    %c0_0 = arith.constant 0 : index
    %0 = vector.load %arg1[%c0, %c0_0] : memref<8x384xf32, #tpu.memory_space<vmem>>, vector<8x384xf32>
    %c0_1 = arith.constant 0 : index
    %c0_2 = arith.constant 0 : index
    %1 = vector.load %arg2[%c0_1, %c0_2] : memref<384x128xf32, #tpu.memory_space<vmem>>, vector<384x128xf32>
    %cst = arith.constant dense<0.000000e+00> : vector<8x128xf32>
    %2 = tpu.matmul %0, %1, %cst {dimension_numbers = #tpu.dot_dimension_numbers<[1], [0], [0], [1], [0, 0, 1, 1], [], []>} : vector<8x384xf32>, vector<384x128xf32>, vector<8x128xf32> -> vector<8x128xf32>
    %c0_3 = arith.constant 0 : index
    %c0_4 = arith.constant 0 : index
    %3 = vector.load %arg3[%c0_3, %c0_4] : memref<1x128xf32, #tpu.memory_space<vmem>>, vector<1x128xf32>
    %4 = vector.broadcast %3 : vector<1x128xf32> to vector<8x128xf32>
    %5 = arith.addf %2, %4 : vector<8x128xf32>
    %c0_5 = arith.constant 0 : index
    %c0_6 = arith.constant 0 : index
    %6 = vector.load %arg4[%c0_5, %c0_6] : memref<128x128xf32, #tpu.memory_space<vmem>>, vector<128x128xf32>
    %cst_7 = arith.constant dense<0.000000e+00> : vector<8x128xf32>
    %7 = tpu.matmul %5, %6, %cst_7 {dimension_numbers = #tpu.dot_dimension_numbers<[1], [0], [0], [1], [0, 0, 1, 1], [], []>} : vector<8x128xf32>, vector<128x128xf32>, vector<8x128xf32> -> vector<8x128xf32>
    %c0_8 = arith.constant 0 : index
    %c0_9 = arith.constant 0 : index
    %8 = vector.load %arg5[%c0_8, %c0_9] : memref<1x128xf32, #tpu.memory_space<vmem>>, vector<1x128xf32>
    %9 = vector.broadcast %8 : vector<1x128xf32> to vector<8x128xf32>
    %10 = arith.addf %7, %9 : vector<8x128xf32>
    %c0_10 = arith.constant 0 : index
    %c0_11 = arith.constant 0 : index
    %11 = vector.load %arg6[%c0_10, %c0_11] : memref<8x128xf32, #tpu.memory_space<vmem>>, vector<8x128xf32>
    tpu.vector_store %arg6[%c0_10, %c0_11], %10 {strides = array<i32>} : memref<8x128xf32, #tpu.memory_space<vmem>>, vector<8x128xf32>,
    return
  }
  func.func @transform_0(%arg0: i32) -> (i32, i32) {
    %c0_i32 = arith.constant 0 : i32
    %c0_i32_0 = arith.constant 0 : i32
    return %arg0, %c0_i32 : i32, i32
  }
  func.func @transform_1(%arg0: i32) -> (i32, i32) {
    %c0_i32 = arith.constant 0 : i32
    %c0_i32_0 = arith.constant 0 : i32
    %c0_i32_1 = arith.constant 0 : i32
    return %c0_i32, %c0_i32_0 : i32, i32
  }
  func.func @transform_2(%arg0: i32) -> (i32, i32) {
    %c0_i32 = arith.constant 0 : i32
    %c0_i32_0 = arith.constant 0 : i32
    %c0_i32_1 = arith.constant 0 : i32
    return %c0_i32, %c0_i32_0 : i32, i32
  }
  func.func @transform_3(%arg0: i32) -> (i32, i32) {
    %c0_i32 = arith.constant 0 : i32
    %c0_i32_0 = arith.constant 0 : i32
    %c0_i32_1 = arith.constant 0 : i32
    return %c0_i32, %c0_i32_0 : i32, i32
  }
  func.func @transform_4(%arg0: i32) -> (i32, i32) {
    %c0_i32 = arith.constant 0 : i32
    %c0_i32_0 = arith.constant 0 : i32
    %c0_i32_1 = arith.constant 0 : i32
    return %c0_i32, %c0_i32_0 : i32, i32
  }
  func.func @transform_5(%arg0: i32) -> (i32, i32) {
    %c0_i32 = arith.constant 0 : i32
    %c0_i32_0 = arith.constant 0 : i32
    return %arg0, %c0_i32 : i32, i32
  }
}

</mosaic_0001>

<bundles_post_ra>
// kernel: tpu_custom_call.1
= control target key start
LH: loop header
LB: loop body
LE: loop exit
PB: predicated region body
PF: predicated region fallthrough
CT: control target
= control target key end

     0   :  { %10 = vsyncpa [#allocation3], 0  ;;  %s811_s0 = inlined_call_operand.hbm [shape: f32[8,384], index: 0, kind: input, shape index: {}]   ;;  %s812_s1 = inlined_call_operand.hbm [shape: f32[384,128], index: 1, kind: input, shape index: {}]   ;;  %s813_s2 = inlined_call_operand.vmem [shape: f32[1,128], index: 2, kind: input, shape index: {}]   ;;  %s814_s3 = inlined_call_operand.hbm [shape: f32[128,128], index: 3, kind: input, shape index: {}]   ;;  %s815_s4 = inlined_call_operand.vmem [shape: f32[1,128], index: 4, kind: input, shape index: {}]   ;;  %s816_s5 = inlined_call_operand.hbm [shape: f32[8,128], index: 5, kind: output, shape index: {}]  }
   0x1   :  { %11 = vsyncpa [#allocation6], 0 }
   0x2   :  { %12 = vsyncpa [#allocation4], 0  ;;  %s692_s18 = smov [#allocation5]   ;;  %s598_s22 = scalar_lea.hbm %s812_s1, 6144 }
   0x3   :  { %s28_s19 = sshll.u32 %s692_s18, 4  ;;  %p599_p0 = scmp.ne.s32.totalorder %s812_s1, %s598_s22  ;;  %s29_s19 = int_to_ptr.vmem [resolvable:$true] %s28_s19 }
   0x4   :  { %p602_p1 = scmp.lt.u32.totalorder %s598_s22, %s812_s1 }
   0x6   :  { %p604_p2 = pnand %p602_p1, %p599_p0 }
   0x8   :  { %607 = shalt.err (!%p604_p2)
}
   0x9   :  { %s608_s27 = scalar_lea.vmem %s29_s19, 6144  ;;  %p613_p4 = scmp.lt.s32.totalorder %s29_s19, %s29_s19 }
   0xa   :  { %p609_p3 = scmp.ne.s32.totalorder %s29_s19, %s608_s27  ;;  %p614_p5 = scmp.lt.s32.totalorder %s608_s27, %s608_s27 }
   0xc   :  { %p615_p6 = por %p614_p5, %p613_p4 }
   0xe   :  { %p616_p7 = pnand %p615_p6, %p609_p3 }
  0x10   :  { %619 = shalt.err (!%p616_p7)
}
  0x11   :  { %s693_s28 = smov 128   ;;  %s694_s29 = smov 8  }
  0x12   :  { %34 = dma.hbm_to_vmem [thread:$0]  %s812_s1, 6144, %s29_s19, [#allocation6], %s693_s28, %s693_s28, %s694_s29  }
  0x13   :  { %s695_s7 = smov [#allocation2]   ;;  %s696_s9 = smov [#allocation7]  }
  0x14   :  { %s19_s8 = sshll.u32 %s695_s7, 4  ;;  %s42_s10 = sshll.u32 %s696_s9, 4  ;;  %s20_s8 = int_to_ptr.vmem [resolvable:$true] %s19_s8  ;;  %s43_s10 = int_to_ptr.vmem [resolvable:$true] %s42_s10 }
  0x15   :  { %s620_s13 = scalar_lea.hbm %s811_s0, 384 }
  0x16   :  { %p621_p8 = scmp.ne.s32.totalorder %s811_s0, %s620_s13  ;;  %p624_p9 = scmp.lt.u32.totalorder %s620_s13, %s811_s0 }
  0x18   :  { %p626_p10 = pnand %p624_p9, %p621_p8 }
  0x1a   :  { %629 = shalt.err (!%p626_p10)
}
  0x1b   :  { %s630_s1 = scalar_lea.vmem %s20_s8, 384  ;;  %p635_p12 = scmp.lt.s32.totalorder %s20_s8, %s20_s8 }
  0x1c   :  { %p631_p11 = scmp.ne.s32.totalorder %s20_s8, %s630_s1  ;;  %p636_p13 = scmp.lt.s32.totalorder %s630_s1, %s630_s1 }
  0x1e   :  { %p637_p0 = por %p636_p13, %p635_p12 }
  0x20   :  { %p638_p1 = pnand %p637_p0, %p631_p11 }
  0x22   :  { %641 = shalt.err (!%p638_p1)
}
  0x23   :  { %22 = dma.hbm_to_vmem [thread:$0]  %s811_s0, 384, %s20_s8, [#allocation3]  }
  0x24   :  { %s642_s22 = scalar_lea.hbm %s814_s3, 2048 }
  0x25   :  { %p643_p2 = scmp.ne.s32.totalorder %s814_s3, %s642_s22  ;;  %p646_p3 = scmp.lt.u32.totalorder %s642_s22, %s814_s3 }
  0x27   :  { %p648_p4 = pnand %p646_p3, %p643_p2 }
  0x29   :  { %651 = shalt.err (!%p648_p4)
}
  0x2a   :  { %s652_s27 = scalar_lea.vmem %s43_s10, 2048  ;;  %p657_p6 = scmp.lt.s32.totalorder %s43_s10, %s43_s10 }
  0x2b   :  { %p653_p5 = scmp.ne.s32.totalorder %s43_s10, %s652_s27  ;;  %p658_p7 = scmp.lt.s32.totalorder %s652_s27, %s652_s27 }
  0x2d   :  { %p659_p8 = por %p658_p7, %p657_p6 }
  0x2f   :  { %p660_p9 = pnand %p659_p8, %p653_p5 }
  0x31   :  { %663 = shalt.err (!%p660_p9)
}
  0x32   :  { %48 = dma.hbm_to_vmem [thread:$0]  %s814_s3, 2048, %s43_s10, [#allocation6], %s693_s28, %s693_s28, %s694_s29  }
  0x33   :  { %686 = dma.done.wait [#allocation3], 384  }
  0x34   :  { %687 = vsyncadd [#allocation3], 4294966912 }
  0x35   :  { %688 = dma.done.wait [#allocation6], 8192  }
  0x36   :  { %689 = vsyncadd [#allocation6], 4294959104  ;;  %v697_v0 = vmov 0.0|0.0   ;;  %vm698_vm0 = vmmov 0   ;;  %v699_v1 = vmov 0.0   ;;  %v79_v2 = vld [vmem:[#allocation5 + $0x80] sm:$0xff] }
  0x37   :  { %541 = vmatprep.subr.bf16.mxu1 %v697_v0  ;;  %471 = vmatprep.mubr.msk.f32.mxu1 %vm698_vm0, %v699_v1  ;;  %v80_v3 = vld [vmem:[#allocation5 + $0x88] sm:$0xff]  ;;  %v63_v4 = vld [vmem:[#allocation5] sm:$0xff]  ;;  %v81_v7 = vld [vmem:[#allocation5 + $0x90] sm:$0xff]  ;;  %s700_s7 = smov [#allocation8]  }
  0x38   :  { %v509_v5 = vpack.c.bf16 %v80_v3, %v79_v2  ;;  %v64_v6 = vld [vmem:[#allocation5 + $0x8] sm:$0xff]  ;;  %v82_v8 = vld [vmem:[#allocation5 + $0x98] sm:$0xff]  ;;  %v65_v11 = vld [vmem:[#allocation5 + $0x10] sm:$0xff]  ;;  %s358_s8 = sshll.u32 %s700_s7, 4  ;;  %s359_s8 = int_to_ptr.vmem [resolvable:$true] %s358_s8 }
  0x39   :  { %v511_v9 = vpack.c.bf16 %v64_v6, %v63_v4  ;;  %v513_v10 = vpack.c.bf16 %v82_v8, %v81_v7  ;;  %v66_v12 = vld [vmem:[#allocation5 + $0x18] sm:$0xff]  ;;  %v95_v13 = vld [vmem:[#allocation5 + $0x100] sm:$0xff]  ;;  %v96_v14 = vld [vmem:[#allocation5 + $0x108] sm:$0xff]  ;;  %s664_s9 = scalar_lea.vmem %s359_s8, 128  ;;  %p669_p11 = scmp.lt.s32.totalorder %s359_s8, %s359_s8 }
  0x3a   :  { %510 = vmatprep.subr.bf16.mxu0 %v509_v5  ;;  %v83_v15 = vld [vmem:[#allocation5 + $0xa0] sm:$0xff]  ;;  %v84_v16 = vld [vmem:[#allocation5 + $0xa8] sm:$0xff]  ;;  %v515_v17 = vpack.c.bf16 %v66_v12, %v65_v11  ;;  %v542_v18 = vpack.c.bf16 %v96_v14, %v95_v13  ;;  %v97_v19 = vld [vmem:[#allocation5 + $0x110] sm:$0xff]  ;;  %p665_p10 = scmp.ne.s32.totalorder %s359_s8, %s664_s9  ;;  %p670_p12 = scmp.lt.s32.totalorder %s664_s9, %s664_s9 }
  0x3b   :  { %512 = vmatpush3.bf16.msra.mxu0 %v511_v9  ;;  %v517_v20 = vpack.c.bf16 %v84_v16, %v83_v15  ;;  %v67_v21 = vld [vmem:[#allocation5 + $0x20] sm:$0xff]  ;;  %v68_v22 = vld [vmem:[#allocation5 + $0x28] sm:$0xff]  ;;  %v98_v23 = vld [vmem:[#allocation5 + $0x118] sm:$0xff] }
  0x3c   :  { %514 = vmatprep.subr.bf16.mxu0 %v513_v10  ;;  %543 = vmatpush3.bf16.msra.mxu1 %v542_v18  ;;  %v545_v24 = vpack.c.bf16 %v98_v23, %v97_v19  ;;  %v85_v25 = vld [vmem:[#allocation5 + $0xb0] sm:$0xff]  ;;  %v86_v26 = vld [vmem:[#allocation5 + $0xb8] sm:$0xff]  ;;  %v99_v27 = vld [vmem:[#allocation5 + $0x120] sm:$0xff]  ;;  %v519_v29 = vpack.c.bf16 %v68_v22, %v67_v21  ;;  %p671_p13 = por %p670_p12, %p669_p11 }
  0x3d   :  { %544 = vmatprep.subr.bf16.mxu1 %v697_v0  ;;  %v100_v28 = vld [vmem:[#allocation5 + $0x128] sm:$0xff]  ;;  %v521_v30 = vpack.c.bf16 %v86_v26, %v85_v25  ;;  %v69_v31 = vld [vmem:[#allocation5 + $0x30] sm:$0xff]  ;;  %v70_v32 = vld [vmem:[#allocation5 + $0x38] sm:$0xff] }
  0x3e   :  { %v548_v33 = vpack.c.bf16 %v100_v28, %v99_v27  ;;  %v87_v34 = vld [vmem:[#allocation5 + $0xc0] sm:$0xff]  ;;  %v88_v35 = vld [vmem:[#allocation5 + $0xc8] sm:$0xff]  ;;  %v101_v36 = vld [vmem:[#allocation5 + $0x130] sm:$0xff]  ;;  %v523_v38 = vpack.c.bf16 %v70_v32, %v69_v31  ;;  %p672_p0 = pnand %p671_p13, %p665_p10 }
  0x3f   :  { %516 = vmatpush3.bf16.msra.mxu0 %v515_v17  ;;  %v102_v37 = vld [vmem:[#allocation5 + $0x138] sm:$0xff]  ;;  %v525_v39 = vpack.c.bf16 %v88_v35, %v87_v34  ;;  %v71_v40 = vld [vmem:[#allocation5 + $0x40] sm:$0xff]  ;;  %v72_v41 = vld [vmem:[#allocation5 + $0x48] sm:$0xff] }
  0x40   :  { %518 = vmatprep.subr.bf16.mxu0 %v517_v20  ;;  %546 = vmatpush3.bf16.msra.mxu1 %v545_v24  ;;  %v551_v42 = vpack.c.bf16 %v102_v37, %v101_v36  ;;  %v89_v43 = vld [vmem:[#allocation5 + $0xd0] sm:$0xff]  ;;  %v90_v44 = vld [vmem:[#allocation5 + $0xd8] sm:$0xff]  ;;  %v103_v45 = vld [vmem:[#allocation5 + $0x140] sm:$0xff]  ;;  %v527_v48 = vpack.c.bf16 %v72_v41, %v71_v40 }
  0x41   :  { %547 = vmatprep.subr.bf16.mxu1 %v697_v0  ;;  %v104_v46 = vld [vmem:[#allocation5 + $0x148] sm:$0xff]  ;;  %v61_v47 = vld [vmem:[#allocation2 + $0x8] sm:$0xff]  ;;  %v529_v49 = vpack.c.bf16 %v90_v44, %v89_v43  ;;  %v74_v51 = vld [vmem:[#allocation5 + $0x58] sm:$0xff] }
  0x42   :  { %182 = vmatprep.mubr.f32.mxu0 %v61_v47  ;;  %v73_v50 = vld [vmem:[#allocation5 + $0x50] sm:$0xff]  ;;  %v554_v52 = vpack.c.bf16 %v104_v46, %v103_v45  ;;  %v91_v53 = vld [vmem:[#allocation5 + $0xe0] sm:$0xff]  ;;  %v92_v54 = vld [vmem:[#allocation5 + $0xe8] sm:$0xff] }
  0x43   :  { %520 = vmatpush3.bf16.msra.mxu0 %v519_v29  ;;  %v105_v55 = vld [vmem:[#allocation5 + $0x150] sm:$0xff]  ;;  %v106_v56 = vld [vmem:[#allocation5 + $0x158] sm:$0xff]  ;;  %v531_v57 = vpack.c.bf16 %v74_v51, %v73_v50  ;;  %v533_v58 = vpack.c.bf16 %v92_v54, %v91_v53  ;;  %v75_v59 = vld [vmem:[#allocation5 + $0x60] sm:$0xff] }
  0x44   :  { %522 = vmatprep.subr.bf16.mxu0 %v521_v30  ;;  %549 = vmatpush3.bf16.msra.mxu1 %v548_v33  ;;  %v76_v60 = vld [vmem:[#allocation5 + $0x68] sm:$0xff]  ;;  %v557_v61 = vpack.c.bf16 %v106_v56, %v105_v55  ;;  %v93_v62 = vld [vmem:[#allocation5 + $0xf0] sm:$0xff]  ;;  %v94_v63 = vld [vmem:[#allocation5 + $0xf8] sm:$0xff] }
  0x45   :  { %550 = vmatprep.subr.bf16.mxu1 %v697_v0  ;;  %v107_v2 = vld [vmem:[#allocation5 + $0x160] sm:$0xff]  ;;  %v108_v3 = vld [vmem:[#allocation5 + $0x168] sm:$0xff]  ;;  %v535_v4 = vpack.c.bf16 %v76_v60, %v75_v59  ;;  %v537_v5 = vpack.c.bf16 %v94_v63, %v93_v62  ;;  %v77_v6 = vld [vmem:[#allocation5 + $0x70] sm:$0xff] }
  0x46   :  { %v78_v7 = vld [vmem:[#allocation5 + $0x78] sm:$0xff]  ;;  %v560_v8 = vpack.c.bf16 %v108_v3, %v107_v2  ;;  %v109_v9 = vld [vmem:[#allocation5 + $0x170] sm:$0xff]  ;;  %v258_v12 = vld [vmem:[#allocation7] sm:$0xff] }
  0x47   :  { %524 = vmatpush3.bf16.msra.mxu0 %v523_v38  ;;  %v110_v10 = vld [vmem:[#allocation5 + $0x178] sm:$0xff]  ;;  %v539_v11 = vpack.c.bf16 %v78_v7, %v77_v6  ;;  %v259_v13 = vld [vmem:[#allocation7 + $0x8] sm:$0xff]  ;;  %v260_v17 = vld [vmem:[#allocation7 + $0x10] sm:$0xff] }
  0x48   :  { %526 = vmatprep.subr.bf16.mxu0 %v525_v39  ;;  %552 = vmatpush3.bf16.msra.mxu1 %v551_v42  ;;  %v563_v14 = vpack.c.bf16 %v110_v10, %v109_v9  ;;  %v60_v15 = vld [vmem:[#allocation2] sm:$0xff]  ;;  %v566_v16 = vpack.c.bf16 %v259_v13, %v258_v12  ;;  %v261_v18 = vld [vmem:[#allocation7 + $0x18] sm:$0xff]  ;;  %v262_v21 = vld [vmem:[#allocation7 + $0x20] sm:$0xff] }
  0x49   :  { %553 = vmatprep.subr.bf16.mxu1 %v697_v0  ;;  %v62_v19 = vld [vmem:[#allocation2 + $0x10] sm:$0xff]  ;;  %v569_v20 = vpack.c.bf16 %v261_v18, %v260_v17  ;;  %v263_v22 = vld [vmem:[#allocation7 + $0x28] sm:$0xff]  ;;  %v264_v24 = vld [vmem:[#allocation7 + $0x30] sm:$0xff] }
  0x4a   :  { %v572_v23 = vpack.c.bf16 %v263_v22, %v262_v21  ;;  %v265_v25 = vld [vmem:[#allocation7 + $0x38] sm:$0xff]  ;;  %v266_v27 = vld [vmem:[#allocation7 + $0x40] sm:$0xff]  ;;  %v267_v28 = vld [vmem:[#allocation7 + $0x48] sm:$0xff] }
  0x4b   :  { %528 = vmatpush3.bf16.msra.mxu0 %v527_v48  ;;  %v575_v26 = vpack.c.bf16 %v265_v25, %v264_v24  ;;  %v578_v29 = vpack.c.bf16 %v267_v28, %v266_v27  ;;  %v269_v30 = vld [vmem:[#allocation7 + $0x58] sm:$0xff]  ;;  %v270_v32 = vld [vmem:[#allocation7 + $0x60] sm:$0xff]  ;;  %v271_v33 = vld [vmem:[#allocation7 + $0x68] sm:$0xff] }
  0x4c   :  { %530 = vmatprep.subr.bf16.mxu0 %v529_v49  ;;  %555 = vmatpush3.bf16.msra.mxu1 %v554_v52  ;;  %v584_v34 = vpack.c.bf16 %v271_v33, %v270_v32  ;;  %v272_v35 = vld [vmem:[#allocation7 + $0x70] sm:$0xff]  ;;  %v273_v36 = vld [vmem:[#allocation7 + $0x78] sm:$0xff]  ;;  %v368_v40 = vld [vmem:[%s813_s2] ss:$0 sm:$0xff] }
  0x4d   :  { %556 = vmatprep.subr.bf16.mxu1 %v697_v0  ;;  %v587_v37 = vpack.c.bf16 %v273_v36, %v272_v35 }
  0x4f   :  { %532 = vmatpush3.bf16.msra.mxu0 %v531_v57 }
  0x50   :  { %534 = vmatprep.subr.bf16.mxu0 %v533_v58  ;;  %558 = vmatpush3.bf16.msra.mxu1 %v557_v61 }
  0x51   :  { %559 = vmatprep.subr.bf16.mxu1 %v697_v0 }
  0x53   :  { %536 = vmatpush3.bf16.msra.mxu0 %v535_v4 }
  0x54   :  { %538 = vmatprep.subr.bf16.mxu0 %v537_v5  ;;  %561 = vmatpush3.bf16.msra.mxu1 %v560_v8 }
  0x55   :  { %562 = vmatprep.subr.bf16.mxu1 %v697_v0 }
  0x57   :  { %540 = vmatpush3.bf16.msra.mxu0 %v539_v11 }
  0x58   :  { %565 = vmatprep.subr.bf16.mxu0 %v697_v0  ;;  %564 = vmatpush3.bf16.msra.mxu1 %v563_v14 }
  0x5a   :  { %183 = vmatmul.mubr.f32.vlgmr.msra.gmra.mrb[0].mxu0 %v60_v15 }
  0x5b   :  { %567 = vmatpush3.bf16.msra.mxu0 %v566_v16  ;;  %506 = vmatprep.mubr.msk.f32.mxu0 %vm698_vm0, %v699_v1  ;;  %v268_v1 = vld [vmem:[#allocation7 + $0x50] sm:$0xff] }
  0x5c   :  { %472 = vmatmul.mubr.f32.vlgmr.msra.gmra.mrb[0].mxu1 %v62_v19  ;;  %568 = vmatprep.subr.bf16.mxu0 %v697_v0  ;;  %v581_v31 = vpack.c.bf16 %v269_v30, %v268_v1 }
  0x5f   :  { %570 = vmatpush3.bf16.msra.mxu0 %v569_v20 }
  0x60   :  { %571 = vmatprep.subr.bf16.mxu0 %v697_v0 }
  0x63   :  { %573 = vmatpush3.bf16.msra.mxu0 %v572_v23 }
  0x64   :  { %574 = vmatprep.subr.bf16.mxu0 %v697_v0 }
  0x67   :  { %576 = vmatpush3.bf16.msra.mxu0 %v575_v26 }
  0x68   :  { %577 = vmatprep.subr.bf16.mxu0 %v697_v0 }
  0x6b   :  { %579 = vmatpush3.bf16.msra.mxu0 %v578_v29 }
  0x6c   :  { %580 = vmatprep.subr.bf16.mxu0 %v697_v0 }
  0x6f   :  { %582 = vmatpush3.bf16.msra.mxu0 %v581_v31 }
  0x70   :  { %583 = vmatprep.subr.bf16.mxu0 %v697_v0 }
  0x73   :  { %585 = vmatpush3.bf16.msra.mxu0 %v584_v34 }
  0x74   :  { %586 = vmatprep.subr.bf16.mxu0 %v697_v0  ;;  %v369_v0 = vld [vmem:[%s815_s4] ss:$0 sm:$0xff] }
  0x77   :  { %588 = vmatpush3.bf16.msra.mxu0 %v587_v37 }
 0x12d   :  { %v402_v38 = vpop.f32.mrb[0].mxu0 }
 0x12e   :  { %v403_v39 = vpop.f32.mrb[1].mxu0 }
 0x12f   :  { %v404_v41 = vadd.f32 %v403_v39, %v402_v38  ;;  %v254_v42 = vpop.f32.mrb[0].mxu1 }
 0x130   :  { %v473_v43 = vpop.f32.mrb[1].mxu1 }
 0x131   :  { %v185_v44 = vadd.f32 %v404_v41, %v368_v40 }
 0x133   :  { %v255_v45 = vadd.f32 %v254_v42, %v185_v44 }
 0x135   :  { %507 = vmatmul.mubr.f32.vlgmr.msra.gmra.mrb[2].mxu0 %v255_v45 }
 0x208   :  { %v347_v46 = vpop.f32.mrb[2].mxu0 }
 0x209   :  { %v348_v47 = vadd.f32 %v369_v0, %v347_v46  ;;  %v508_v48 = vpop.f32.mrb[3].mxu0 }
 0x20b   :  { %351 = vst [vmem:[#allocation8] sm:$0xff] %v348_v47 }
 0x20c   :  { %675 = shalt.err (!%p672_p0)
}
 0x20d   :  { %s676_s11 = scalar_lea.hbm %s816_s5, 128 }
 0x20e   :  { %p677_p1 = scmp.ne.s32.totalorder %s816_s5, %s676_s11  ;;  %p680_p2 = scmp.lt.u32.totalorder %s676_s11, %s816_s5 }
 0x210   :  { %p682_p3 = pnand %p680_p2, %p677_p1 }
 0x212   :  { %685 = shalt.err (!%p682_p3)
}
 0x213   :  { %361 = dma.vmem_to_hbm [thread:$0]  %s359_s8, 128, %s816_s5, [#allocation4]  }
 0x214   :  { %690 = dma.done.wait [#allocation4], 128  }
 0x215   :  { %691 = vsyncadd [#allocation4], 4294967168 }
 0x216   :  { %365 = vsyncpa [#allocation3], 1 }
 0x217   :  { %366 = vsyncpa [#allocation6], 1 }
 0x218   :  { %367 = vsyncpa [#allocation4], 1 }

</bundles_post_ra>
